<compile_context>
chip_gen: v6e
topology: v6e:2x2x1
jax: 0.10.0
libtpu: 0.0.40
codegen_flags: <defaults>
</compile_context>

<pallas_src>
import functools

import jax
import jax.numpy as jnp
from jax.experimental import pallas as pl
from jax.experimental.pallas import tpu as pltpu

_LANE = 128
_SUBLANE = 8


def _round_up(x, m):
    return ((x + m - 1) // m) * m


def _softplus(x):
    # numerically stable softplus (VPU + EUP ops, f32)
    return jnp.maximum(x, 0.0) + jnp.log1p(jnp.exp(-jnp.abs(x)))


def prior_kernel(s_ref, v_ref, w1s_ref, w1v_ref, b1_ref, w2_ref, b2_ref,
                 out_ref, *, s_dim, min_stddev):
    mm_dtype = w1s_ref.dtype           # matmul operand dtype (set once at init)

    # fc1 + ReLU: two accumulated matmuls (split-K over [s_prev | v]), f32 acc.
    h = (jnp.dot(s_ref[...].astype(mm_dtype), w1s_ref[...],
                 preferred_element_type=jnp.float32)
         + jnp.dot(v_ref[...].astype(mm_dtype), w1v_ref[...],
                   preferred_element_type=jnp.float32)
         + b1_ref[...].astype(jnp.float32))
    h = jnp.maximum(h, 0.0)                                   # [bb, 2*s_dim]

    # fused fc21|fc22 (+ zero lane padding): one matmul -> [bb, n_out_pad]
    y = (jnp.dot(h.astype(mm_dtype), w2_ref[...],
                 preferred_element_type=jnp.float32)
         + b2_ref[...].astype(jnp.float32))

    if s_dim % _LANE == 0:
        # Lane-aligned split: softplus only on scale-lane vregs (half the EUP work),
        # two unmasked lane-aligned stores.
        out_ref[:, :s_dim] = y[:, :s_dim].astype(out_ref.dtype)
        out_ref[:, s_dim:] = (_softplus(y[:, s_dim:]) + min_stddev).astype(out_ref.dtype)
    else:
        # Row fits few vregs: per-lane mask is effectively free. Padded lanes
        # (col >= 2*s_dim) get softplus(0)+min_stddev garbage; wrapper slices them off.
        col = jax.lax.broadcasted_iota(jnp.int32, y.shape, dimension=1)
        out = jnp.where(col < s_dim, y, _softplus(y) + min_stddev)
        out_ref[...] = out.astype(out_ref.dtype)


def prior_forward(s_prev, v, params, *, min_stddev=0.0, block_b=8192,
                  min_grid_steps=2, out_dtype=jnp.float32):
    """Pallas-backed Prior.forward.

    s_prev: [B, s_dim] f32, v: [B, v_dim + a_dim] f32 (no wrapper-side casts).
    params (from init_prior_params):
        w1_s [s_dim, 2s], w1_v [v+a, 2s], b1 [1, 2s] (f32),
        w2 [2s, n_out_pad] = [W21 | W22 | 0-pad], b2 [1, n_out_pad] (f32),
        where n_out_pad = round_up(2*s_dim, 128).
    min_grid_steps: keep >= this many grid steps when the batch allows it so the
        "parallel" batch axis shards across both v7x TensorCores.
    out_dtype: fused-output dtype (bf16 halves the dominant HBM stream).
    """
    w1_s, w1_v, b1, w2, b2 = params
    B, s_in = s_prev.shape
    v_in = v.shape[1]
    d_hid = w1_s.shape[1]
    s_dim = d_hid // 2
    n_out_pad = w2.shape[1]                     # already 128-lane padded at init

    # --- batch tile: big tiles (amortise ~0.35us/step), but keep >=2 grid steps
    #     on multi-TC parts when the batch is large enough to split.
    bb = min(block_b, B)
    if min_grid_steps > 1 and B >= min_grid_steps * _SUBLANE:
        bb = min(bb, pl.cdiv(B, min_grid_steps))
    if bb < B:
        bb = max(_SUBLANE, (bb // _SUBLANE) * _SUBLANE)   # sublane-aligned tile
    else:
        bb = B                                            # full-dim block always legal
    grid = (pl.cdiv(B, bb),)

    kernel = functools.partial(prior_kernel, s_dim=s_dim, min_stddev=min_stddev)

    def resident(shape):
        # Weights/biases: same block every grid step -> stay VMEM-resident.
        return pl.BlockSpec(shape, lambda i: tuple(0 for _ in shape))

    # Advisory cost hint so XLA overlaps neighbours with this short kernel.
    flops = 2 * B * (s_in + v_in) * d_hid + 2 * B * d_hid * n_out_pad
    transcendentals = 2 * B * (n_out_pad - s_dim)          # exp + log1p lanes
    bytes_accessed = (
        s_prev.size * s_prev.dtype.itemsize
        + v.size * v.dtype.itemsize
        + sum(int(a.size) * a.dtype.itemsize for a in (w1_s, w1_v, b1, w2, b2))
        + B * n_out_pad * jnp.dtype(out_dtype).itemsize)
    cost = pl.CostEstimate(flops=int(flops),
                           transcendentals=int(transcendentals),
                           bytes_accessed=int(bytes_accessed))

    # VMEM check: worst case (bb=8192) double-buffered tiles ~12 MiB << 32 MiB
    # scoped default on all generations (v7x included), so no vmem_limit override.
    fused = pl.pallas_call(
        kernel,
        out_shape=jax.ShapeDtypeStruct((B, n_out_pad), out_dtype),
        grid_spec=pltpu.PrefetchScalarGridSpec(
            num_scalar_prefetch=0,
            grid=grid,
            in_specs=[
                pl.BlockSpec((bb, s_in), lambda i: (i, 0)),     # s_prev tile
                pl.BlockSpec((bb, v_in), lambda i: (i, 0)),     # v tile
                resident((s_in, d_hid)),                        # W1_s
                resident((v_in, d_hid)),                        # W1_v
                resident((1, d_hid)),                           # b1
                resident((d_hid, n_out_pad)),                   # W2 = [W21|W22|0]
                resident((1, n_out_pad)),                       # b2 = [b21|b22|0]
            ],
            out_specs=pl.BlockSpec((bb, n_out_pad), lambda i: (i, 0)),
        ),
        compiler_params=pltpu.CompilerParams(
            dimension_semantics=("parallel",)),                 # batch rows independent
        cost_estimate=cost,
    )(s_prev, v, w1_s, w1_v, b1, w2, b2)

    # Wrapper-side split of the lane-dense fused output (drops zero padding).
    loc = fused[:, :s_dim]
    scale = fused[:, s_dim:2 * s_dim]
    return loc, scale


def init_prior_params(key, s_dim, v_dim, a_dim, *, matmul_dtype=None):
    """Deterministic synthetic init (shapes match nn.Linear in Prior.__init__),
    stored once in the kernel-friendly layout: split W1, fused + 128-lane padded
    [W21|W22], and (optionally) matmul weights pre-cast to `matmul_dtype`."""
    d_in = s_dim + v_dim + a_dim
    d_hid = s_dim * 2
    n_out_pad = _round_up(2 * s_dim, _LANE)
    k1, k2, k3, k4, k5, k6 = jax.random.split(key, 6)
    # weights stored transposed: [in_features, out_features]
    w1 = 0.1 * jax.random.normal(k1, (d_in, d_hid), jnp.float32)
    b1 = 0.1 * jax.random.normal(k2, (1, d_hid), jnp.float32)
    w21 = 0.1 * jax.random.normal(k3, (d_hid, s_dim), jnp.float32)
    b21 = 0.1 * jax.random.normal(k4, (1, s_dim), jnp.float32)
    w22 = 0.1 * jax.random.normal(k5, (d_hid, s_dim), jnp.float32)
    b22 = 0.1 * jax.random.normal(k6, (1, s_dim), jnp.float32)

    w1_s = w1[:s_dim]                              # [s_dim, d_hid]
    w1_v = w1[s_dim:]                              # [v_dim + a_dim, d_hid]
    pad = n_out_pad - 2 * s_dim
    w2 = jnp.concatenate(
        [w21, w22, jnp.zeros((d_hid, pad), jnp.float32)], axis=1)   # [d_hid, n_out_pad]
    b2 = jnp.concatenate(
        [b21, b22, jnp.zeros((1, pad), jnp.float32)], axis=1)       # [1, n_out_pad]

    if matmul_dtype is not None:                   # one-time cast (not per call)
        w1_s = w1_s.astype(matmul_dtype)
        w1_v = w1_v.astype(matmul_dtype)
        w2 = w2.astype(matmul_dtype)
    return (w1_s, w1_v, b1, w2, b2)


def prior_reference(s_prev, v, params, *, min_stddev=0.0):
    """Pure-JAX reference (mathematically identical to the PyTorch forward)."""
    w1_s, w1_v, b1, w2, b2 = [jnp.asarray(p, jnp.float32) for p in params]
    d_hid = w1_s.shape[1]
    s_dim = d_hid // 2
    h = jax.nn.relu(s_prev @ w1_s + v @ w1_v + b1)
    y = h @ w2[:, :2 * s_dim] + b2[:, :2 * s_dim]
    loc = y[:, :s_dim]
    scale = jax.nn.softplus(y[:, s_dim:]) + min_stddev
    return loc, scale


if __name__ == "__main__":
    s_dim, v_dim, a_dim = 32, 16, 16
    min_stddev = 0.01

    key = jax.random.PRNGKey(0)
    kp, ks, kv, ks2, kv2 = jax.random.split(key, 5)
    params = init_prior_params(kp, s_dim, v_dim, a_dim)

    # --- small-batch check (single grid step, f32 everywhere) ---
    batch = 8
    s_prev = jax.random.normal(ks, (batch, s_dim), jnp.float32)
    v = jax.random.normal(kv, (batch, v_dim + a_dim), jnp.float32)

    loc, scale = prior_forward(s_prev, v, params, min_stddev=min_stddev)
    jax.block_until_ready((loc, scale))

    loc_ref, scale_ref = prior_reference(s_prev, v, params, min_stddev=min_stddev)
    assert loc.shape == (batch, s_dim) and scale.shape == (batch, s_dim)
    assert jnp.allclose(loc, loc_ref, atol=1e-5, rtol=1e-5)
    assert jnp.allclose(scale, scale_ref, atol=1e-5, rtol=1e-5)
    assert bool(jnp.all(scale > 0.0))

    # --- larger batch: default big tiles, >=2-step "parallel" grid (v7x 2-TC) ---
    batch_big = 1024
    s_prev_b = jax.random.normal(ks2, (batch_big, s_dim), jnp.float32)
    v_b = jax.random.normal(kv2, (batch_big, v_dim + a_dim), jnp.float32)

    loc_b, scale_b = prior_forward(s_prev_b, v_b, params, min_stddev=min_stddev)
    jax.block_until_ready((loc_b, scale_b))
    loc_rb, scale_rb = prior_reference(s_prev_b, v_b, params, min_stddev=min_stddev)
    assert jnp.allclose(loc_b, loc_rb, atol=1e-5, rtol=1e-5)
    assert jnp.allclose(scale_b, scale_rb, atol=1e-5, rtol=1e-5)
    assert bool(jnp.all(scale_b > 0.0))

    # --- bf16 weights (cast once at init) + bf16 output; f32 inputs streamed,
    #     f32 accumulate/elementwise inside the kernel ---
    params_bf16 = init_prior_params(kp, s_dim, v_dim, a_dim,
                                    matmul_dtype=jnp.bfloat16)
    loc_bf, scale_bf = prior_forward(s_prev_b, v_b, params_bf16,
                                     min_stddev=min_stddev,
                                     out_dtype=jnp.bfloat16)
    jax.block_until_ready((loc_bf, scale_bf))
    loc_rf, scale_rf = prior_reference(s_prev_b, v_b, params_bf16,
                                       min_stddev=min_stddev)
    assert jnp.allclose(loc_bf.astype(jnp.float32), loc_rf, atol=5e-2, rtol=5e-2)
    assert jnp.allclose(scale_bf.astype(jnp.float32), scale_rf, atol=5e-2, rtol=5e-2)
    assert bool(jnp.all(scale_bf.astype(jnp.float32) > 0.0))

    print("KERNEL_OK")
</pallas_src>

<mosaic_0001>
module attributes {stable_mosaic.version = 11 : i64} {
  func.func @prior_kernel(%arg0: i32, %arg1: memref<8x32xf32, #tpu.memory_space<vmem>>, %arg2: memref<8x32xf32, #tpu.memory_space<vmem>>, %arg3: memref<32x64xf32, #tpu.memory_space<vmem>>, %arg4: memref<32x64xf32, #tpu.memory_space<vmem>>, %arg5: memref<1x64xf32, #tpu.memory_space<vmem>>, %arg6: memref<64x128xf32, #tpu.memory_space<vmem>>, %arg7: memref<1x128xf32, #tpu.memory_space<vmem>>, %arg8: memref<8x128xf32, #tpu.memory_space<vmem>>) attributes {dimension_semantics = [#tpu.dimension_semantics<parallel>], iteration_bounds = array<i64: 1>, scalar_prefetch = 0 : i64, scratch_operands = 0 : i64, tpu.core_type = #tpu.core_type<tc>, window_params = [{transform_indices = @transform_0, window_bounds = array<i64: 8, 32>}, {transform_indices = @transform_1, window_bounds = array<i64: 8, 32>}, {pipeline_mode = #tpu.pipeline_mode<synchronous>, transform_indices = @transform_2, window_bounds = array<i64: 32, 64>}, {pipeline_mode = #tpu.pipeline_mode<synchronous>, transform_indices = @transform_3, window_bounds = array<i64: 32, 64>}, {pipeline_mode = #tpu.pipeline_mode<synchronous>, transform_indices = @transform_4, window_bounds = array<i64: 1, 64>}, {pipeline_mode = #tpu.pipeline_mode<synchronous>, transform_indices = @transform_5, window_bounds = array<i64: 64, 128>}, {pipeline_mode = #tpu.pipeline_mode<synchronous>, transform_indices = @transform_6, window_bounds = array<i64: 1, 128>}, {transform_indices = @transform_7, window_bounds = array<i64: 8, 128>}]} {
    %c0 = arith.constant 0 : index
    %c0_0 = arith.constant 0 : index
    %0 = vector.load %arg1[%c0, %c0_0] : memref<8x32xf32, #tpu.memory_space<vmem>>, vector<8x32xf32>
    %c0_1 = arith.constant 0 : index
    %c0_2 = arith.constant 0 : index
    %1 = vector.load %arg3[%c0_1, %c0_2] : memref<32x64xf32, #tpu.memory_space<vmem>>, vector<32x64xf32>
    %cst = arith.constant dense<0.000000e+00> : vector<8x64xf32>
    %2 = tpu.matmul %0, %1, %cst {dimension_numbers = #tpu.dot_dimension_numbers<[1], [0], [0], [1], [0, 0, 1, 1], [], []>} : vector<8x32xf32>, vector<32x64xf32>, vector<8x64xf32> -> vector<8x64xf32>
    %c0_3 = arith.constant 0 : index
    %c0_4 = arith.constant 0 : index
    %3 = vector.load %arg2[%c0_3, %c0_4] : memref<8x32xf32, #tpu.memory_space<vmem>>, vector<8x32xf32>
    %c0_5 = arith.constant 0 : index
    %c0_6 = arith.constant 0 : index
    %4 = vector.load %arg4[%c0_5, %c0_6] : memref<32x64xf32, #tpu.memory_space<vmem>>, vector<32x64xf32>
    %cst_7 = arith.constant dense<0.000000e+00> : vector<8x64xf32>
    %5 = tpu.matmul %3, %4, %cst_7 {dimension_numbers = #tpu.dot_dimension_numbers<[1], [0], [0], [1], [0, 0, 1, 1], [], []>} : vector<8x32xf32>, vector<32x64xf32>, vector<8x64xf32> -> vector<8x64xf32>
    %6 = arith.addf %2, %5 : vector<8x64xf32>
    %c0_8 = arith.constant 0 : index
    %c0_9 = arith.constant 0 : index
    %7 = vector.load %arg5[%c0_8, %c0_9] : memref<1x64xf32, #tpu.memory_space<vmem>>, vector<1x64xf32>
    %8 = vector.broadcast %7 : vector<1x64xf32> to vector<8x64xf32>
    %9 = arith.addf %6, %8 : vector<8x64xf32>
    %cst_10 = arith.constant 0.000000e+00 : f32
    %10 = vector.broadcast %cst_10 : f32 to vector<8x64xf32>
    %11 = arith.maximumf %9, %10 : vector<8x64xf32>
    %c0_11 = arith.constant 0 : index
    %c0_12 = arith.constant 0 : index
    %12 = vector.load %arg6[%c0_11, %c0_12] : memref<64x128xf32, #tpu.memory_space<vmem>>, vector<64x128xf32>
    %cst_13 = arith.constant dense<0.000000e+00> : vector<8x128xf32>
    %13 = tpu.matmul %11, %12, %cst_13 {dimension_numbers = #tpu.dot_dimension_numbers<[1], [0], [0], [1], [0, 0, 1, 1], [], []>} : vector<8x64xf32>, vector<64x128xf32>, vector<8x128xf32> -> vector<8x128xf32>
    %c0_14 = arith.constant 0 : index
    %c0_15 = arith.constant 0 : index
    %14 = vector.load %arg7[%c0_14, %c0_15] : memref<1x128xf32, #tpu.memory_space<vmem>>, vector<1x128xf32>
    %15 = vector.broadcast %14 : vector<1x128xf32> to vector<8x128xf32>
    %16 = arith.addf %13, %15 : vector<8x128xf32>
    %17 = tpu.iota {dimensions = array<i32: 1>} : vector<8x128xi32>
    %c32_i32 = arith.constant 32 : i32
    %18 = vector.broadcast %c32_i32 : i32 to vector<8x128xi32>
    %19 = arith.cmpi slt, %17, %18 : vector<8x128xi32>
    %cst_16 = arith.constant 0.000000e+00 : f32
    %20 = vector.broadcast %cst_16 : f32 to vector<8x128xf32>
    %21 = arith.maximumf %16, %20 : vector<8x128xf32>
    %22 = math.absf %16 : vector<8x128xf32>
    %cst_17 = arith.constant 0.000000e+00 : f32
    %23 = vector.broadcast %cst_17 : f32 to vector<8x128xf32>
    %24 = arith.subf %23, %22 : vector<8x128xf32>
    %25 = math.exp %24 : vector<8x128xf32>
    %26 = math.log1p %25 : vector<8x128xf32>
    %27 = arith.addf %21, %26 : vector<8x128xf32>
    %cst_18 = arith.constant 0.00999999977 : f32
    %28 = vector.broadcast %cst_18 : f32 to vector<8x128xf32>
    %29 = arith.addf %27, %28 : vector<8x128xf32>
    %30 = arith.select %19, %16, %29 : vector<8x128xi1>, vector<8x128xf32>
    %c0_19 = arith.constant 0 : index
    %c0_20 = arith.constant 0 : index
    %31 = vector.load %arg8[%c0_19, %c0_20] : memref<8x128xf32, #tpu.memory_space<vmem>>, vector<8x128xf32>
    tpu.vector_store %arg8[%c0_19, %c0_20], %30 {strides = array<i32>} : memref<8x128xf32, #tpu.memory_space<vmem>>, vector<8x128xf32>,
    return
  }
  func.func @transform_0(%arg0: i32) -> (i32, i32) {
    %c0_i32 = arith.constant 0 : i32
    %c0_i32_0 = arith.constant 0 : i32
    return %arg0, %c0_i32 : i32, i32
  }
  func.func @transform_1(%arg0: i32) -> (i32, i32) {
    %c0_i32 = arith.constant 0 : i32
    %c0_i32_0 = arith.constant 0 : i32
    return %arg0, %c0_i32 : i32, i32
  }
  func.func @transform_2(%arg0: i32) -> (i32, i32) {
    %c0_i32 = arith.constant 0 : i32
    %c0_i32_0 = arith.constant 0 : i32
    %c0_i32_1 = arith.constant 0 : i32
    return %c0_i32, %c0_i32_0 : i32, i32
  }
  func.func @transform_3(%arg0: i32) -> (i32, i32) {
    %c0_i32 = arith.constant 0 : i32
    %c0_i32_0 = arith.constant 0 : i32
    %c0_i32_1 = arith.constant 0 : i32
    return %c0_i32, %c0_i32_0 : i32, i32
  }
  func.func @transform_4(%arg0: i32) -> (i32, i32) {
    %c0_i32 = arith.constant 0 : i32
    %c0_i32_0 = arith.constant 0 : i32
    %c0_i32_1 = arith.constant 0 : i32
    return %c0_i32, %c0_i32_0 : i32, i32
  }
  func.func @transform_5(%arg0: i32) -> (i32, i32) {
    %c0_i32 = arith.constant 0 : i32
    %c0_i32_0 = arith.constant 0 : i32
    %c0_i32_1 = arith.constant 0 : i32
    return %c0_i32, %c0_i32_0 : i32, i32
  }
  func.func @transform_6(%arg0: i32) -> (i32, i32) {
    %c0_i32 = arith.constant 0 : i32
    %c0_i32_0 = arith.constant 0 : i32
    %c0_i32_1 = arith.constant 0 : i32
    return %c0_i32, %c0_i32_0 : i32, i32
  }
  func.func @transform_7(%arg0: i32) -> (i32, i32) {
    %c0_i32 = arith.constant 0 : i32
    %c0_i32_0 = arith.constant 0 : i32
    return %arg0, %c0_i32 : i32, i32
  }
}

</mosaic_0001>

<bundles_post_ra>
// kernel: tpu_custom_call.1
= control target key start
LH: loop header
LB: loop body
LE: loop exit
PB: predicated region body
PF: predicated region fallthrough
CT: control target
= control target key end

     0   :  { %12 = vsyncpa [#allocation3], 0  ;;  %s679_s0 = inlined_call_operand.hbm [shape: f32[8,32], index: 0, kind: input, shape index: {}]   ;;  %s680_s1 = inlined_call_operand.hbm [shape: f32[8,32], index: 1, kind: input, shape index: {}]   ;;  %s681_s2 = inlined_call_operand.hbm [shape: f32[32,64], index: 2, kind: input, shape index: {}]   ;;  %s682_s3 = inlined_call_operand.hbm [shape: f32[32,64], index: 3, kind: input, shape index: {}]   ;;  %s683_s4 = inlined_call_operand.vmem [shape: f32[1,64], index: 4, kind: input, shape index: {}]   ;;  %s684_s5 = inlined_call_operand.hbm [shape: f32[64,128], index: 5, kind: input, shape index: {}]   ;;  %s685_s6 = inlined_call_operand.vmem [shape: f32[1,128], index: 6, kind: input, shape index: {}]   ;;  %s686_s7 = inlined_call_operand.hbm [shape: f32[8,128], index: 7, kind: output, shape index: {}]  }
   0x1   :  { %13 = vsyncpa [#allocation6], 0 }
   0x2   :  { %14 = vsyncpa [#allocation9], 0 }
   0x3   :  { %15 = vsyncpa [#allocation4], 0  ;;  %s591_s24 = smov [#allocation5]  }
   0x4   :  { %s32_s25 = sshll.u32 %s591_s24, 4  ;;  %s33_s25 = int_to_ptr.vmem [resolvable:$true] %s32_s25 }
   0x5   :  { %s471_s26 = scalar_lea.vmem %s33_s25, 128  ;;  %p476_p1 = scmp.lt.s32.totalorder %s33_s25, %s33_s25 }
   0x6   :  { %p472_p0 = scmp.ne.s32.totalorder %s33_s25, %s471_s26  ;;  %p477_p2 = scmp.lt.s32.totalorder %s471_s26, %s471_s26 }
   0x8   :  { %p478_p3 = por %p477_p2, %p476_p1 }
   0xa   :  { %p479_p4 = pnand %p478_p3, %p472_p0 }
   0xc   :  { %482 = shalt.err (!%p479_p4)
}
   0xd   :  { %35 = dma.hbm_to_vmem [thread:$0]  %s680_s1, 128, %s33_s25, [#allocation6]  }
   0xe   :  { %s592_s29 = smov [#allocation8]   ;;  %s593_s8 = smov [#allocation2]  }
   0xf   :  { %s53_s30 = sshll.u32 %s592_s29, 4  ;;  %s22_s9 = sshll.u32 %s593_s8, 4  ;;  %s54_s30 = int_to_ptr.vmem [resolvable:$true] %s53_s30  ;;  %s23_s9 = int_to_ptr.vmem [resolvable:$true] %s22_s9 }
  0x10   :  { %s491_s10 = scalar_lea.vmem %s54_s30, 512  ;;  %p496_p6 = scmp.lt.s32.totalorder %s54_s30, %s54_s30 }
  0x11   :  { %p492_p5 = scmp.ne.s32.totalorder %s54_s30, %s491_s10  ;;  %p497_p7 = scmp.lt.s32.totalorder %s491_s10, %s491_s10 }
  0x13   :  { %p498_p8 = por %p497_p7, %p496_p6 }
  0x15   :  { %p499_p9 = pnand %p498_p8, %p492_p5 }
  0x17   :  { %502 = shalt.err (!%p499_p9)
}
  0x18   :  { %s594_s11 = smov 128   ;;  %s595_s12 = smov 8  }
  0x19   :  { %59 = dma.hbm_to_vmem [thread:$0]  %s682_s3, 512, %s54_s30, [#allocation9], %s594_s11, %s594_s11, %s595_s12  }
  0x1a   :  { %s511_s1 = scalar_lea.vmem %s23_s9, 128  ;;  %p516_p11 = scmp.lt.s32.totalorder %s23_s9, %s23_s9 }
  0x1b   :  { %p512_p10 = scmp.ne.s32.totalorder %s23_s9, %s511_s1  ;;  %p517_p12 = scmp.lt.s32.totalorder %s511_s1, %s511_s1 }
  0x1d   :  { %p518_p13 = por %p517_p12, %p516_p11 }
  0x1f   :  { %p519_p0 = pnand %p518_p13, %p512_p10 }
  0x21   :  { %522 = shalt.err (!%p519_p0)
}
  0x22   :  { %25 = dma.hbm_to_vmem [thread:$0]  %s679_s0, 128, %s23_s9, [#allocation3]  }
  0x23   :  { %s596_s17 = smov [#allocation7]   ;;  %s597_s19 = smov [#allocation10]  }
  0x24   :  { %s41_s18 = sshll.u32 %s596_s17, 4  ;;  %s67_s20 = sshll.u32 %s597_s19, 4  ;;  %s42_s18 = int_to_ptr.vmem [resolvable:$true] %s41_s18  ;;  %s68_s20 = int_to_ptr.vmem [resolvable:$true] %s67_s20 }
  0x25   :  { %s531_s21 = scalar_lea.vmem %s42_s18, 512  ;;  %p536_p2 = scmp.lt.s32.totalorder %s42_s18, %s42_s18 }
  0x26   :  { %p532_p1 = scmp.ne.s32.totalorder %s42_s18, %s531_s21  ;;  %p537_p3 = scmp.lt.s32.totalorder %s531_s21, %s531_s21 }
  0x28   :  { %p538_p4 = por %p537_p3, %p536_p2 }
  0x2a   :  { %p539_p5 = pnand %p538_p4, %p532_p1 }
  0x2c   :  { %542 = shalt.err (!%p539_p5)
}
  0x2d   :  { %47 = dma.hbm_to_vmem [thread:$0]  %s681_s2, 512, %s42_s18, [#allocation6], %s594_s11, %s594_s11, %s595_s12  }
  0x2e   :  { %s551_s0 = scalar_lea.vmem %s68_s20, 1024  ;;  %p556_p7 = scmp.lt.s32.totalorder %s68_s20, %s68_s20 }
  0x2f   :  { %p552_p6 = scmp.ne.s32.totalorder %s68_s20, %s551_s0  ;;  %p557_p8 = scmp.lt.s32.totalorder %s551_s0, %s551_s0 }
  0x31   :  { %p558_p9 = por %p557_p8, %p556_p7 }
  0x33   :  { %p559_p10 = pnand %p558_p9, %p552_p6 }
  0x35   :  { %562 = shalt.err (!%p559_p10)
}
  0x36   :  { %73 = dma.hbm_to_vmem [thread:$0]  %s684_s5, 1024, %s68_s20, [#allocation9], %s594_s11, %s594_s11, %s595_s12  }
  0x37   :  { %583 = dma.done.wait [#allocation3], 128  }
  0x38   :  { %584 = vsyncadd [#allocation3], 4294967168 }
  0x39   :  { %585 = dma.done.wait [#allocation6], 640  }
  0x3a   :  { %586 = vsyncadd [#allocation6], 4294966656 }
  0x3b   :  { %587 = dma.done.wait [#allocation9], 1536  }
  0x3c   :  { %588 = vsyncadd [#allocation9], 4294965760  ;;  %v598_v0 = vmov 0.0   ;;  %vm599_vm0 = vmmov 0   ;;  %v100_v1 = vld [vmem:[#allocation8 + $0x18] sm:$0xff]  ;;  %v99_v2 = vld [vmem:[#allocation8 + $0x10] sm:$0xff]  ;;  %v346_v38 = vlaneseq }
  0x3d   :  { %408 = vmatprep.subr.mxu1 %v598_v0  ;;  %416 = vmatprep.mubr.msk.f32.mxu1 %vm599_vm0, %v598_v0  ;;  %v98_v3 = vld [vmem:[#allocation8 + $0x8] sm:$0xff]  ;;  %v97_v4 = vld [vmem:[#allocation8] sm:$0xff]  ;;  %v96_v5 = vld [vmem:[#allocation5] sm:$0xff]  ;;  %vm101_vm1 = vcmask 261120   ;;  %vm272_vm2 = vcmask 523264  }
  0x3e   :  { %430 = vmatprep.subr.mxu0 %v598_v0  ;;  %446 = vmatprep.mubr.msk.f32.mxu0 %vm599_vm0, %v598_v0  ;;  %v95_v6 = vld [vmem:[#allocation7 + $0x18] sm:$0xff]  ;;  %v94_v7 = vld [vmem:[#allocation7 + $0x10] sm:$0xff]  ;;  %v93_v8 = vld [vmem:[#allocation7 + $0x8] sm:$0xff]  ;;  %v347_v43 = vand.u32 127, %v346_v38 }
  0x3f   :  { %409 = vmatpush3.msra.mxu1 %v100_v1  ;;  %v92_v9 = vld [vmem:[#allocation7] sm:$0xff]  ;;  %v91_v10 = vld [vmem:[#allocation2] sm:$0xff]  ;;  %v264_v11 = vld [vmem:[#allocation10 + $0x38] sm:$0xff] }
  0x40   :  { %410 = vmatprep.subr.mxu1 %v598_v0  ;;  %431 = vmatpush3.msra.mxu0 %v264_v11  ;;  %v263_v12 = vld [vmem:[#allocation10 + $0x30] sm:$0xff]  ;;  %v262_v13 = vld [vmem:[#allocation10 + $0x28] sm:$0xff]  ;;  %v261_v14 = vld [vmem:[#allocation10 + $0x20] sm:$0xff]  ;;  %vm348_vm4 = vcmp.lt.s32.totalorder %v347_v43, 32 }
  0x41   :  { %411 = vmatpush3.msra.mxu1 %v99_v2  ;;  %432 = vmatprep.subr.mxu0 %v598_v0  ;;  %v260_v15 = vld [vmem:[#allocation10 + $0x18] sm:$0xff]  ;;  %v259_v16 = vld [vmem:[#allocation10 + $0x10] sm:$0xff]  ;;  %v258_v17 = vld [vmem:[#allocation10 + $0x8] sm:$0xff] }
  0x42   :  { %412 = vmatprep.subr.mxu1 %v598_v0  ;;  %433 = vmatpush3.msra.mxu0 %v263_v12  ;;  %v257_v18 = vld [vmem:[#allocation10] sm:$0xff]  ;;  %v386_v22 = vld [vmem:[%s683_s4] ss:$0 sm:$0xff]  ;;  %s600_s4 = smov [#allocation11]  }
  0x43   :  { %413 = vmatpush3.msra.mxu1 %v98_v3  ;;  %434 = vmatprep.subr.mxu0 %v598_v0  ;;  %v387_v27 = vld [vmem:[%s685_s6] ss:$0 sm:$0xff]  ;;  %s373_s6 = sshll.u32 %s600_s4, 4  ;;  %s374_s6 = int_to_ptr.vmem [resolvable:$true] %s373_s6 }
  0x44   :  { %414 = vmatprep.subr.mxu1 %v598_v0  ;;  %435 = vmatpush3.msra.mxu0 %v262_v13  ;;  %s563_s27 = scalar_lea.vmem %s374_s6, 128  ;;  %p568_p12 = scmp.lt.s32.totalorder %s374_s6, %s374_s6 }
  0x45   :  { %415 = vmatpush3.msra.mxu1 %v97_v4  ;;  %436 = vmatprep.subr.mxu0 %v598_v0  ;;  %p564_p11 = scmp.ne.s32.totalorder %s374_s6, %s563_s27  ;;  %p569_p13 = scmp.lt.s32.totalorder %s563_s27, %s563_s27 }
  0x46   :  { %417 = vmatmul.mubr.msk.f32.vlgmr.msra.gmra.mxu1 %vm101_vm1, %v96_v5  ;;  %419 = vmatprep.subr.mxu1 %v598_v0 }
  0x47   :  { %420 = vmatpush3.msra.mxu1 %v95_v6  ;;  %427 = vmatprep.mubr.msk.f32.mxu1 %vm599_vm0, %v598_v0  ;;  %p570_p0 = por %p569_p13, %p568_p12 }
  0x48   :  { %421 = vmatprep.subr.mxu1 %v598_v0  ;;  %437 = vmatpush3.msra.mxu0 %v261_v14 }
  0x49   :  { %422 = vmatpush3.msra.mxu1 %v94_v7  ;;  %438 = vmatprep.subr.mxu0 %v598_v0  ;;  %p571_p1 = pnand %p570_p0, %p564_p11 }
  0x4a   :  { %423 = vmatprep.subr.mxu1 %v598_v0  ;;  %439 = vmatpush3.msra.mxu0 %v260_v15 }
  0x4b   :  { %424 = vmatpush3.msra.mxu1 %v93_v8  ;;  %440 = vmatprep.subr.mxu0 %v598_v0 }
  0x4c   :  { %425 = vmatprep.subr.mxu1 %v598_v0  ;;  %441 = vmatpush3.msra.mxu0 %v259_v16 }
  0x4d   :  { %426 = vmatpush3.msra.mxu1 %v92_v9  ;;  %442 = vmatprep.subr.mxu0 %v598_v0 }
  0x4e   :  { %428 = vmatmul.mubr.msk.f32.vlgmr.msra.gmra.mxu1 %vm101_vm1, %v91_v10  ;;  %443 = vmatpush3.msra.mxu0 %v258_v17 }
  0x4f   :  { %444 = vmatprep.subr.mxu0 %v598_v0 }
  0x50   :  { %445 = vmatpush3.msra.mxu0 %v257_v18 }
 0x106   :  { %v171_v19 = vpop.f32.mrf.mxu1 }
 0x108   :  { %v418_v20 = vpop.f32.mrf.mxu1 }
 0x10e   :  { %v244_v21 = vpop.f32.mrf.mxu1 }
 0x10f   :  { %v245_v23 = vadd.f32 %v244_v21, %v171_v19 }
 0x110   :  { %v429_v24 = vpop.f32.mrf.mxu1 }
 0x111   :  { %v255_v25 = vadd.f32 %v386_v22, %v245_v23 }
 0x113   :  { %v256_v26 = vmax.f32 %v255_v25, 0.0 }
 0x115   :  { %447 = vmatmul.mubr.msk.f32.vlgmr.msra.gmra.mxu0 %vm272_vm2, %v256_v26 }
 0x1d5   :  { %v342_v28 = vpop.f32.mrf.mxu0 }
 0x1d6   :  { %v343_v29 = vadd.f32 %v387_v27, %v342_v28 }
 0x1d7   :  { %v448_v30 = vpop.f32.mrf.mxu0 }
 0x1d8   :  { %v350_v31 = vand.u32 2147483647, %v343_v29  ;;  %v349_v44 = vmax.f32 %v343_v29, 0.0 }
 0x1da   :  { %v351_v32 = vsub.f32 0.0, %v350_v31 }
 0x1dc   :  { %v352_v33 = vmul.f32 1.442695, %v351_v32 }
 0x1de   :  { %459 = vpow2.f32 %v352_v33 }
 0x1eb   :  { %v460_v34 = vpop.eup %459 }
 0x1ec   :  { %v354_v35 = vadd.f32 1.0, %v460_v34  ;;  %v357_v36 = vmul.f32 -0.5, %v460_v34  ;;  %v360_v39 = vand.u32 2147483647, %v460_v34 }
 0x1ee   :  { %461 = vlog2.f32 %v354_v35  ;;  %v358_v37 = vadd.f32 1.0, %v357_v36  ;;  %vm361_vm3 = vcmp.lt.f32.partialorder %v360_v39, 0.0004427343 }
 0x1f0   :  { %v359_v42 = vmul.f32 %v460_v34, %v358_v37 }
 0x1fb   :  { %v462_v40 = vpop.eup %461 }
 0x1fc   :  { %v356_v41 = vmul.f32 0.6931472, %v462_v40 }
 0x1fe   :  { %v362_v45 = vsel %vm361_vm3, %v359_v42, %v356_v41 }
 0x1ff   :  { %v363_v46 = vadd.f32 %v362_v45, %v349_v44 }
 0x201   :  { %v364_v47 = vadd.f32 0.01, %v363_v46 }
 0x203   :  { %v365_v48 = vsel %vm348_vm4, %v343_v29, %v364_v47 }
 0x204   :  { %366 = vst [vmem:[#allocation11] sm:$0xff] %v365_v48 }
 0x205   :  { %574 = shalt.err (!%p571_p1)
}
 0x206   :  { %376 = dma.vmem_to_hbm [thread:$0]  %s374_s6, 128, %s686_s7, [#allocation4]  }
 0x207   :  { %589 = dma.done.wait [#allocation4], 128  }
 0x208   :  { %590 = vsyncadd [#allocation4], 4294967168 }
 0x209   :  { %380 = vsyncpa [#allocation3], 1 }
 0x20a   :  { %381 = vsyncpa [#allocation6], 1 }
 0x20b   :  { %382 = vsyncpa [#allocation9], 1 }
 0x20c   :  { %383 = vsyncpa [#allocation4], 1 }

</bundles_post_ra>
